<compile_context>
chip_gen: v7x
topology: tpu7x:2x2x1
jax: 0.10.0
libtpu: 0.0.40
codegen_flags: <defaults>
</compile_context>

<pallas_src>
import functools

import jax
import jax.numpy as jnp
from jax.experimental import pallas as pl
from jax.experimental.pallas import tpu as pltpu


def _round_up(a: int, b: int) -> int:
    return (a + b - 1) // b * b


# ---------------------------------------------------------------------------
# Pallas kernel
# ---------------------------------------------------------------------------
def _series_decomp_kernel(kernel_size: int, x_ref, res_ref, mean_ref):
    """x_ref/res_ref/mean_ref: (L, TC) blocks (batch dim squeezed)."""
    pad = (kernel_size - 1) // 2
    x = x_ref[...].astype(jnp.float32)                     # (L, TC)
    L, TC = x.shape

    # Edge-replicated padding along time (sublane axis), done in VMEM.
    if pad > 0:
        front = jnp.broadcast_to(x[0:1, :], (pad, TC))
        back = jnp.broadcast_to(x[L - 1:L, :], (pad, TC))
        xp = jnp.concatenate([front, x, back], axis=0)     # (L + k - 1, TC)
    else:
        xp = x

    # Sliding-window sum: k statically-unrolled shifted adds (VPU).
    acc = xp[0:L, :]
    for j in range(1, kernel_size):
        acc = acc + xp[j:j + L, :]
    mean = acc * jnp.float32(1.0 / kernel_size)

    mean_ref[...] = mean.astype(mean_ref.dtype)
    res_ref[...] = (x - mean).astype(res_ref.dtype)


# ---------------------------------------------------------------------------
# Wrapper
# ---------------------------------------------------------------------------
def series_decomp(x, kernel_size: int):
    """x: (B, L, C) float -> (res, moving_mean), each (B, L, C)."""
    assert kernel_size % 2 == 1, (
        "series_decomp requires an odd kernel_size (PyTorch module would "
        "otherwise fail on x - moving_mean shape mismatch)")
    B, L, C = x.shape
    dtype = x.dtype

    # Lane-dense output: pad channels to a multiple of 128, slice off after.
    C_pad = _round_up(C, 128)
    x_p = jnp.pad(x, ((0, 0), (0, 0), (0, C_pad - C))) if C_pad != C else x

    # Channel tile: largest multiple of 128 (<= 512) that divides C_pad.
    m = C_pad // 128
    tc_blocks = 1
    for g in (4, 3, 2, 1):
        if m % g == 0:
            tc_blocks = g
            break
    TC = 128 * tc_blocks
    grid = (B, C_pad // TC)

    blk = lambda: pl.BlockSpec((None, L, TC), lambda b, c: (b, 0, c))
    kernel = functools.partial(_series_decomp_kernel, kernel_size)
    itemsize = jnp.dtype(dtype).itemsize

    res_p, mean_p = pl.pallas_call(
        kernel,
        out_shape=(jax.ShapeDtypeStruct((B, L, C_pad), dtype),
                   jax.ShapeDtypeStruct((B, L, C_pad), dtype)),
        grid=grid,
        in_specs=[blk()],
        out_specs=(blk(), blk()),
        compiler_params=pltpu.CompilerParams(
            dimension_semantics=("parallel", "parallel")),
        cost_estimate=pl.CostEstimate(
            flops=B * L * C_pad * (kernel_size + 1),
            transcendentals=0,
            bytes_accessed=3 * B * L * C_pad * itemsize),
    )(x_p)

    if C_pad != C:
        res_p = res_p[:, :, :C]
        mean_p = mean_p[:, :, :C]
    return res_p, mean_p


# ---------------------------------------------------------------------------
# Pure-JAX reference (mirrors the PyTorch forward exactly)
# ---------------------------------------------------------------------------
def series_decomp_ref(x, kernel_size: int):
    pad = (kernel_size - 1) // 2
    front = jnp.repeat(x[:, 0:1, :], pad, axis=1)
    end = jnp.repeat(x[:, -1:, :], pad, axis=1)
    xp = jnp.concatenate([front, x, end], axis=1)           # (B, L+k-1, C)
    L = x.shape[1]
    mean = jnp.stack(
        [xp[:, t:t + kernel_size, :].mean(axis=1) for t in range(L)], axis=1)
    return x - mean, mean


# ---------------------------------------------------------------------------
if __name__ == "__main__":
    key = jax.random.PRNGKey(0)
    ok = True

    configs = [
        # (B, L, C, kernel_size)  -- small shapes consistent with the module
        (2, 32, 16, 25),   # TimeMixer default moving_avg=25; C padded 16->128
        (2, 40, 128, 5),   # channels already lane-dense
    ]
    for i, (B, L, C, k) in enumerate(configs):
        key, sub = jax.random.split(key)
        x = jax.random.normal(sub, (B, L, C), dtype=jnp.float32)

        res, mean = series_decomp(x, k)
        jax.block_until_ready((res, mean))

        res_ref, mean_ref = series_decomp_ref(x, k)
        assert res.shape == (B, L, C) and mean.shape == (B, L, C)
        ok &= bool(jnp.allclose(mean, mean_ref, atol=1e-5, rtol=1e-5))
        ok &= bool(jnp.allclose(res, res_ref, atol=1e-5, rtol=1e-5))
        # decomposition identity: res + moving_mean == x
        ok &= bool(jnp.allclose(res + mean, x, atol=1e-5, rtol=1e-5))

    if ok:
        print("KERNEL_OK")
    else:
        raise SystemExit("mismatch vs reference")
</pallas_src>

<mosaic_0001>
module attributes {stable_mosaic.version = 11 : i64} {
  func.func @_series_decomp_kernel(%arg0: i32, %arg1: i32, %arg2: memref<1x32x128xf32, #tpu.memory_space<vmem>>, %arg3: memref<1x32x128xf32, #tpu.memory_space<vmem>>, %arg4: memref<1x32x128xf32, #tpu.memory_space<vmem>>) attributes {dimension_semantics = [#tpu.dimension_semantics<parallel>, #tpu.dimension_semantics<parallel>], iteration_bounds = array<i64: 2, 1>, scalar_prefetch = 0 : i64, scratch_operands = 0 : i64, tpu.core_type = #tpu.core_type<tc>, window_params = [{transform_indices = @transform_0, window_bounds = array<i64: 1, 32, 128>}, {transform_indices = @transform_1, window_bounds = array<i64: 1, 32, 128>}, {transform_indices = @transform_2, window_bounds = array<i64: 1, 32, 128>}]} {
    %c0 = arith.constant 0 : index
    %c0_0 = arith.constant 0 : index
    %c0_1 = arith.constant 0 : index
    %0 = vector.load %arg2[%c0, %c0_0, %c0_1] : memref<1x32x128xf32, #tpu.memory_space<vmem>>, vector<1x32x128xf32>
    %1 = vector.shape_cast %0 : vector<1x32x128xf32> to vector<32x128xf32>
    %2 = vector.extract_strided_slice %1 {offsets = [0, 0], sizes = [1, 128], strides = [1, 1]} : vector<32x128xf32> to vector<1x128xf32>
    %3 = vector.shape_cast %2 : vector<1x128xf32> to vector<1x128xf32>
    %4 = vector.broadcast %3 : vector<1x128xf32> to vector<12x128xf32>
    %5 = vector.extract_strided_slice %1 {offsets = [31, 0], sizes = [1, 128], strides = [1, 1]} : vector<32x128xf32> to vector<1x128xf32>
    %6 = vector.shape_cast %5 : vector<1x128xf32> to vector<1x128xf32>
    %7 = vector.broadcast %6 : vector<1x128xf32> to vector<12x128xf32>
    %8 = tpu.concatenate %4, %1, %7 in 0 : vector<12x128xf32>, vector<32x128xf32>, vector<12x128xf32> -> vector<56x128xf32>
    %9 = vector.extract_strided_slice %8 {offsets = [0, 0], sizes = [32, 128], strides = [1, 1]} : vector<56x128xf32> to vector<32x128xf32>
    %10 = vector.extract_strided_slice %8 {offsets = [1, 0], sizes = [32, 128], strides = [1, 1]} : vector<56x128xf32> to vector<32x128xf32>
    %11 = arith.addf %9, %10 : vector<32x128xf32>
    %12 = vector.extract_strided_slice %8 {offsets = [2, 0], sizes = [32, 128], strides = [1, 1]} : vector<56x128xf32> to vector<32x128xf32>
    %13 = arith.addf %11, %12 : vector<32x128xf32>
    %14 = vector.extract_strided_slice %8 {offsets = [3, 0], sizes = [32, 128], strides = [1, 1]} : vector<56x128xf32> to vector<32x128xf32>
    %15 = arith.addf %13, %14 : vector<32x128xf32>
    %16 = vector.extract_strided_slice %8 {offsets = [4, 0], sizes = [32, 128], strides = [1, 1]} : vector<56x128xf32> to vector<32x128xf32>
    %17 = arith.addf %15, %16 : vector<32x128xf32>
    %18 = vector.extract_strided_slice %8 {offsets = [5, 0], sizes = [32, 128], strides = [1, 1]} : vector<56x128xf32> to vector<32x128xf32>
    %19 = arith.addf %17, %18 : vector<32x128xf32>
    %20 = vector.extract_strided_slice %8 {offsets = [6, 0], sizes = [32, 128], strides = [1, 1]} : vector<56x128xf32> to vector<32x128xf32>
    %21 = arith.addf %19, %20 : vector<32x128xf32>
    %22 = vector.extract_strided_slice %8 {offsets = [7, 0], sizes = [32, 128], strides = [1, 1]} : vector<56x128xf32> to vector<32x128xf32>
    %23 = arith.addf %21, %22 : vector<32x128xf32>
    %24 = vector.extract_strided_slice %8 {offsets = [8, 0], sizes = [32, 128], strides = [1, 1]} : vector<56x128xf32> to vector<32x128xf32>
    %25 = arith.addf %23, %24 : vector<32x128xf32>
    %26 = vector.extract_strided_slice %8 {offsets = [9, 0], sizes = [32, 128], strides = [1, 1]} : vector<56x128xf32> to vector<32x128xf32>
    %27 = arith.addf %25, %26 : vector<32x128xf32>
    %28 = vector.extract_strided_slice %8 {offsets = [10, 0], sizes = [32, 128], strides = [1, 1]} : vector<56x128xf32> to vector<32x128xf32>
    %29 = arith.addf %27, %28 : vector<32x128xf32>
    %30 = vector.extract_strided_slice %8 {offsets = [11, 0], sizes = [32, 128], strides = [1, 1]} : vector<56x128xf32> to vector<32x128xf32>
    %31 = arith.addf %29, %30 : vector<32x128xf32>
    %32 = vector.extract_strided_slice %8 {offsets = [12, 0], sizes = [32, 128], strides = [1, 1]} : vector<56x128xf32> to vector<32x128xf32>
    %33 = arith.addf %31, %32 : vector<32x128xf32>
    %34 = vector.extract_strided_slice %8 {offsets = [13, 0], sizes = [32, 128], strides = [1, 1]} : vector<56x128xf32> to vector<32x128xf32>
    %35 = arith.addf %33, %34 : vector<32x128xf32>
    %36 = vector.extract_strided_slice %8 {offsets = [14, 0], sizes = [32, 128], strides = [1, 1]} : vector<56x128xf32> to vector<32x128xf32>
    %37 = arith.addf %35, %36 : vector<32x128xf32>
    %38 = vector.extract_strided_slice %8 {offsets = [15, 0], sizes = [32, 128], strides = [1, 1]} : vector<56x128xf32> to vector<32x128xf32>
    %39 = arith.addf %37, %38 : vector<32x128xf32>
    %40 = vector.extract_strided_slice %8 {offsets = [16, 0], sizes = [32, 128], strides = [1, 1]} : vector<56x128xf32> to vector<32x128xf32>
    %41 = arith.addf %39, %40 : vector<32x128xf32>
    %42 = vector.extract_strided_slice %8 {offsets = [17, 0], sizes = [32, 128], strides = [1, 1]} : vector<56x128xf32> to vector<32x128xf32>
    %43 = arith.addf %41, %42 : vector<32x128xf32>
    %44 = vector.extract_strided_slice %8 {offsets = [18, 0], sizes = [32, 128], strides = [1, 1]} : vector<56x128xf32> to vector<32x128xf32>
    %45 = arith.addf %43, %44 : vector<32x128xf32>
    %46 = vector.extract_strided_slice %8 {offsets = [19, 0], sizes = [32, 128], strides = [1, 1]} : vector<56x128xf32> to vector<32x128xf32>
    %47 = arith.addf %45, %46 : vector<32x128xf32>
    %48 = vector.extract_strided_slice %8 {offsets = [20, 0], sizes = [32, 128], strides = [1, 1]} : vector<56x128xf32> to vector<32x128xf32>
    %49 = arith.addf %47, %48 : vector<32x128xf32>
    %50 = vector.extract_strided_slice %8 {offsets = [21, 0], sizes = [32, 128], strides = [1, 1]} : vector<56x128xf32> to vector<32x128xf32>
    %51 = arith.addf %49, %50 : vector<32x128xf32>
    %52 = vector.extract_strided_slice %8 {offsets = [22, 0], sizes = [32, 128], strides = [1, 1]} : vector<56x128xf32> to vector<32x128xf32>
    %53 = arith.addf %51, %52 : vector<32x128xf32>
    %54 = vector.extract_strided_slice %8 {offsets = [23, 0], sizes = [32, 128], strides = [1, 1]} : vector<56x128xf32> to vector<32x128xf32>
    %55 = arith.addf %53, %54 : vector<32x128xf32>
    %56 = vector.extract_strided_slice %8 {offsets = [24, 0], sizes = [32, 128], strides = [1, 1]} : vector<56x128xf32> to vector<32x128xf32>
    %57 = arith.addf %55, %56 : vector<32x128xf32>
    %cst = arith.constant 4.000000e-02 : f32
    %58 = vector.broadcast %cst : f32 to vector<32x128xf32>
    %59 = arith.mulf %57, %58 : vector<32x128xf32>
    %c0_2 = arith.constant 0 : index
    %c0_3 = arith.constant 0 : index
    %c0_4 = arith.constant 0 : index
    %60 = vector.load %arg4[%c0_2, %c0_3, %c0_4] : memref<1x32x128xf32, #tpu.memory_space<vmem>>, vector<1x32x128xf32>
    %61 = vector.shape_cast %60 : vector<1x32x128xf32> to vector<32x128xf32>
    %62 = vector.shape_cast %59 : vector<32x128xf32> to vector<1x32x128xf32>
    tpu.vector_store %arg4[%c0_2, %c0_3, %c0_4], %62 {strides = array<i32>} : memref<1x32x128xf32, #tpu.memory_space<vmem>>, vector<1x32x128xf32>,
    %63 = arith.subf %1, %59 : vector<32x128xf32>
    %c0_5 = arith.constant 0 : index
    %c0_6 = arith.constant 0 : index
    %c0_7 = arith.constant 0 : index
    %64 = vector.load %arg3[%c0_5, %c0_6, %c0_7] : memref<1x32x128xf32, #tpu.memory_space<vmem>>, vector<1x32x128xf32>
    %65 = vector.shape_cast %64 : vector<1x32x128xf32> to vector<32x128xf32>
    %66 = vector.shape_cast %63 : vector<32x128xf32> to vector<1x32x128xf32>
    tpu.vector_store %arg3[%c0_5, %c0_6, %c0_7], %66 {strides = array<i32>} : memref<1x32x128xf32, #tpu.memory_space<vmem>>, vector<1x32x128xf32>,
    return
  }
  func.func @transform_0(%arg0: i32, %arg1: i32) -> (i32, i32, i32) {
    %c0_i32 = arith.constant 0 : i32
    %c0_i32_0 = arith.constant 0 : i32
    return %arg0, %c0_i32, %arg1 : i32, i32, i32
  }
  func.func @transform_1(%arg0: i32, %arg1: i32) -> (i32, i32, i32) {
    %c0_i32 = arith.constant 0 : i32
    %c0_i32_0 = arith.constant 0 : i32
    return %arg0, %c0_i32, %arg1 : i32, i32, i32
  }
  func.func @transform_2(%arg0: i32, %arg1: i32) -> (i32, i32, i32) {
    %c0_i32 = arith.constant 0 : i32
    %c0_i32_0 = arith.constant 0 : i32
    return %arg0, %c0_i32, %arg1 : i32, i32, i32
  }
}

</mosaic_0001>

<bundles_post_ra>
// kernel: tpu_custom_call.1
= control target key start
LH: loop header
LB: loop body
LE: loop exit
PB: predicated region body
PF: predicated region fallthrough
CT: control target
= control target key end

     0   :  { %8 = vsyncpa [#allocation3], 0  ;;  %s1363_s0 = inlined_call_operand.hbm [shape: f32[2,32,128], index: 0, kind: input, shape index: {}]   ;;  %s1364_s1 = inlined_call_operand.hbm [shape: f32[2,32,128], index: 1, kind: output, shape index: {0}]   ;;  %s1365_s2 = inlined_call_operand.hbm [shape: f32[2,32,128], index: 2, kind: output, shape index: {1}]  }
   0x1   :  { %10 = vsyncpa [#allocation3 + $0x1], 0 }
   0x2   :  { %11 = vsyncpa [#allocation4], 0 }
   0x3   :  { %13 = vsyncpa [#allocation4 + $0x1], 0 }
   0x4   :  { %14 = vsyncpa [#allocation7], 0 }
   0x5   :  { %16 = vsyncpa [#allocation7 + $0x1], 0  ;;  %s895_s9 = smov 0   ;;  %s897_s10 = smov 0  }
   0x6   :  { %s899_s11 = smov 0   ;;  %s901_s12 = smov 0  }
   0x7   :  { %s903_s13 = smov 0   ;;  %s905_s14 = smov 0  }
   0x8 LB: > { %s634_s15 = sadd.s32 4294967295, %s871_s14   ;;  %s635_s16 = sadd.s32 4294967294, %s871_s14   ;;  %s871_s14 = sphi %s905_s14, %s22_s14   ;;  %s867_s13 = sphi %s903_s13, %s1380_s13   ;;  %s863_s12 = sphi %s901_s12, %s1379_s12   ;;  %s859_s11 = sphi %s899_s11, %s1378_s11   ;;  %s855_s10 = sphi %s897_s10, %s1377_s10   ;;  %s851_s9 = sphi %s895_s9, %s1376_s9  }
   0x9   : > { %s34_s17 = sadd.s32 1, %s867_s13  ;;  %s43_s18 = sadd.s32 1, %s859_s11 }
   0xa   : > { %p36_p0 = scmp.ge.s32.totalorder %s34_s17, 2  ;;  %p50_p1 = scmp.ne.s32.totalorder %s859_s11, %s855_s10 }
   0xb   : > { %p51_p2 = scmp.eq.s32.totalorder %s871_s14, 0  ;;  %p56_p3 = scmp.ne.s32.totalorder %s855_s10, %s851_s9 }
   0xc   : > { %s1382_s17 = smov (%p36_p0, %s34_s17), 0  ;;  %p57_p5 = scmp.eq.s32.totalorder %s634_s15, 0 }
   0xd   : > { %p936_p4 = por %p51_p2, %p50_p1  ;;  %s38_s20 = ssub.s32 %s867_s13, %s1382_s17 }
   0xe   : > { %p82_p6 = scmp.eq.s32.totalorder %s634_s15, 1  ;;  %p41_p7 = scmp.eq.s32.totalorder %s38_s20, 0 }
   0xf   : > { %p942_p8 = por %p57_p5, %p56_p3  ;;  %p88_p10 = scmp.eq.s32.totalorder %s635_s16, 1 }
  0x10   : > { %p946_p9 = por %p82_p6, %p50_p1  ;;  %p673_p13 = scmp.lt.s32.totalorder %s871_s14, 2 }
  0x11   : > { %s951_s23 = scalar_select %p41_p7, %s859_s11, %s43_s18  }
  0x12   : > { %s1369_s22 = scalar_select %p946_p9, 1, 0 }
  0x13   : > { %p953_p11 = por %p88_p10, %p56_p3  ;;  %s136_s25 = sand.u32 1, %s859_s11  }
  0x14   : > { %s638_s26 = sshll.u32 %s136_s25, 5  ;;  %s653_s27 = sshll.u32 %s867_s13, 9 }
  0x15   : > { %s1370_s24 = scalar_select %p953_p11, 1, 0 }
  0x16   : > { %s964_s30 = scalar_lea.hbm %s1363_s0, %s653_s27  ;;  %s140_s3 = scalar_lea.vmem [#allocation2], %s638_s26 }
  0x17   : > { %s148_s4 = sshll.u32 %s140_s3, 4  ;;  %p970_p0 = pnand %p673_p13, %p936_p4  ;;  %s966_s4 = int_to_ptr.vmem [resolvable:$true] %s148_s4 }
  0x18   : > { %s975_s6 = scalar_lea.sflag [#allocation3], %s136_s25  ;;  %s727_s7 = scalar_lea.hbm %s964_s30, 512 }
  0x19   : > { %p728_p2 = scmp.ne.s32.totalorder %s964_s30, %s727_s7  ;;  %p729_p3 = pneg %p970_p0 }
  0x1a   : > { %s732_s16 = scalar_lea.hbm %s1363_s0, 1024  ;;  %p733_p4 = scmp.lt.u32.totalorder %s964_s30, %s1363_s0 }
  0x1b   : > { %p730_p5 = pnand %p729_p3, %p728_p2  ;;  %p734_p7 = scmp.lt.u32.totalorder %s732_s16, %s727_s7 }
  0x1c   : > { %p736_p13 = scmp.lt.u32.totalorder %s727_s7, %s964_s30 }
  0x1d   : > { %p731_p6 = pneg %p730_p5  ;;  %p735_p10 = por %p734_p7, %p733_p4 }
  0x1f   : > { %p737_p12 = por %p736_p13, %p735_p10 }
  0x21   : > { %p738_p1 = pnand %p737_p12, %p731_p6 }
  0x23   : > { %741 = shalt.err (!%p738_p1)
}
  0x24   : > { %s742_s20 = scalar_lea.vmem %s966_s4, 512  ;;  %s873_s25 = smov [#allocation2]  }
  0x25   : > { %p743_p2 = scmp.ne.s32.totalorder %s966_s4, %s742_s20  ;;  %s747_s26 = sshll.u32 %s873_s25, 4  ;;  %s748_s26 = int_to_ptr.vmem [resolvable:$false] %s747_s26 }
  0x26   : > { %s749_s27 = scalar_lea.vmem %s748_s26, 1024  ;;  %p750_p9 = scmp.lt.s32.totalorder %s966_s4, %s748_s26 }
  0x27   : > { %p745_p5 = pnand %p743_p2, %p729_p3  ;;  %p751_p4 = scmp.lt.s32.totalorder %s749_s27, %s742_s20 }
  0x29   : > { %p746_p11 = pneg %p745_p5  ;;  %p752_p7 = por %p751_p4, %p750_p9 }
  0x2b   : > { %p753_p10 = pnand %p752_p7, %p746_p11 }
  0x2d   : > { %756 = shalt.err (!%p753_p10)
}
  0x2e   : > { %s874_s28 = smov 128   ;;  %s875_s29 = smov 8  }
  0x2f   : > { %665 = dma.hbm_to_vmem [thread:$0]  (!%p970_p0), %s964_s30, 512, %s966_s4, %s975_s6, %s874_s28, %s874_s28, %s875_s29  }
  0x30   : > { %p156_p12 = scmp.lt.s32.totalorder %s871_s14, 3  ;;  %p1372_p1 = scmp.ge.s32.totalorder %s871_s14, 1 }
  0x32   : > { %p157_p3 = pnand %p1372_p1, %p156_p12 }
  0x33   : > { %s1007_s3 = sand.u32 (!%p157_p3), 1, %s855_s10  }
  0x34   : > { %160 = sbr.rel (%p157_p3) target bundleno = 170 (0xaa), region = 24  ;;  %s1010_s7 = sshll.u32 (!%p157_p3), %s1007_s3, 5 }
  0x35   : > { %s163_s8 = scalar_lea.sflag (!%p157_p3), [#allocation3], %s1007_s3  ;;  %s166_s15 = scalar_lea.vmem (!%p157_p3), [#allocation2], %s1010_s7 }
  0x3b   : > { %838 = dma.done.wait (%p942_p8), %s163_s8, 512  }
  0x3c   : > { %840 = vsyncadd (%p942_p8), %s163_s8, 4294966784  ;;  %v196_v0 = vlaneseq  ;;  %v1018_v4 = vld [vmem:[%s166_s15] sm:$0xff]  ;;  %v1020_v5 = vld [vmem:[%s166_s15 + $0x8] sm:$0xff]  ;;  %vm209_vm0 = vcmask 1043456   ;;  %vm226_vm1 = vcmask 1046528   ;;  %vm244_vm2 = vcmask 1045504  }
  0x3d   : > { %v1022_v6 = vld [vmem:[%s166_s15 + $0x10] sm:$0xff]  ;;  %v1024_v7 = vld [vmem:[%s166_s15 + $0x18] sm:$0xff]  ;;  %v210_v9 = vrot.slane %v1018_v4, 4  ;;  %v211_v10 = vrot.slane %v1020_v5, 4  ;;  %vm262_vm3 = vcmask 1044480   ;;  %vm297_vm4 = vcmask 1042432  }
  0x3e   : > { %v197_v1 = vshrl.u32 %v196_v0, 7  ;;  %v213_v11 = vrot.slane %v1022_v6, 4  ;;  %v215_v13 = vrot.slane %v1024_v7, 4  ;;  %vm315_vm5 = vcmask 1041408   ;;  %s191_s21 = scalar_lea.vmem [#allocation6], %s1010_s7  ;;  %s1262_s4 = scalar_lea.vmem [#allocation5], %s1010_s7 }
  0x3f   : > { %v1037_v14 = vsel %vm209_vm0, %v210_v9, %v211_v10  ;;  %vm333_vm6 = vcmask 1040384   ;;  %s515_s30 = sshll.u32 %s191_s21, 4  ;;  %s654_s5 = sshll.u32 %s863_s12, 9  ;;  %s1268_s30 = int_to_ptr.vmem [resolvable:$true] %s515_s30 }
  0x40   : > { %v198_v2 = vsub.s32 0, %v197_v1  ;;  %v202_v3 = vsub.s32 7, %v197_v1  ;;  %v1040_v15 = vsel %vm209_vm0, %v211_v10, %v213_v11  ;;  %v1050_v18 = vsel %vm209_vm0, %v213_v11, %v215_v13  ;;  %s498_s6 = sshll.u32 %s1262_s4, 4  ;;  %s1275_s19 = scalar_lea.hbm %s1365_s2, %s654_s5  ;;  %s1277_s6 = int_to_ptr.vmem [resolvable:$true] %s498_s6 }
  0x41   : > { %v230_v20 = vrot.slane %v1037_v14, 1  ;;  %v232_v21 = vrot.slane %v1040_v15, 1  ;;  %v234_v22 = vrot.slane %v1050_v18, 1  ;;  %v248_v25 = vrot.slane %v1037_v14, 2  ;;  %s1283_s25 = scalar_lea.hbm %s1364_s1, %s654_s5  ;;  %s484_s26 = scalar_lea.sflag [#allocation7], %s1007_s3 }
  0x42   : > { %v1027_v8 = vrot.slane %v1018_v4, %v198_v2  ;;  %v1033_v12 = vrot.slane %v1024_v7, %v202_v3  ;;  %v250_v29 = vrot.slane %v1040_v15, 2  ;;  %v252_v38 = vrot.slane %v1050_v18, 2  ;;  %s757_s27 = scalar_lea.vmem %s1268_s30, 512  ;;  %p1373_p9 = scmp.ne.s32.totalorder %s1369_s22, 0 }
  0x43   : > { %v1064_v28 = vsel %vm226_vm1, %v230_v20, %v232_v21  ;;  %v1070_v30 = vsel %vm226_vm1, %v232_v21, %v234_v22  ;;  %v266_v44 = vrot.slane %v1037_v14, 3  ;;  %v268_v45 = vrot.slane %v1040_v15, 3  ;;  %p758_p8 = scmp.ne.s32.totalorder %s1268_s30, %s757_s27  ;;  %s876_s28 = smov [#allocation6]  }
  0x44   : > { %v1044_v16 = vsel %vm209_vm0, %v1027_v8, %v210_v9  ;;  %v227_v17 = vrot.slane %v1027_v8, 1  ;;  %v245_v23 = vrot.slane %v1027_v8, 2  ;;  %v242_v33 = vadd.f32 %v1064_v28, %v1037_v14  ;;  %s761_s29 = sshll.u32 %s876_s28, 4  ;;  %s762_s29 = int_to_ptr.vmem [resolvable:$false] %s761_s29 }
  0x45   : > { %v228_v19 = vrot.slane %v1044_v16, 1  ;;  %v246_v24 = vrot.slane %v1044_v16, 2  ;;  %v243_v34 = vadd.f32 %v1070_v30, %v1040_v15  ;;  %v1084_v37 = vsel %vm244_vm2, %v248_v25, %v250_v29  ;;  %p759_p11 = pnand %p758_p8, %p1373_p9  ;;  %s763_s7 = scalar_lea.vmem %s762_s29, 1024 }
  0x46   : > { %v260_v41 = vadd.f32 %v1084_v37, %v242_v33  ;;  %v263_v42 = vrot.slane %v1027_v8, 3  ;;  %v264_v43 = vrot.slane %v1044_v16, 3  ;;  %v1096_v46 = vsel %vm244_vm2, %v250_v29, %v252_v38  ;;  %p764_p6 = scmp.lt.s32.totalorder %s1268_s30, %s762_s29  ;;  %p765_p13 = scmp.lt.s32.totalorder %s763_s7, %s757_s27 }
  0x47   : > { %v229_v26 = vsel %vm226_vm1, %v227_v17, %v228_v19  ;;  %v1061_v27 = vsel %vm226_vm1, %v228_v19, %v230_v20  ;;  %v247_v35 = vsel %vm244_vm2, %v245_v23, %v246_v24  ;;  %v1081_v36 = vsel %vm244_vm2, %v246_v24, %v248_v25  ;;  %p760_p0 = pneg %p759_p11 }
  0x48   : > { %v240_v31 = vadd.f32 %v229_v26, %v1027_v8  ;;  %v241_v32 = vadd.f32 %v1061_v27, %v1044_v16  ;;  %v280_v47 = vrot.slane %v1027_v8, 4  ;;  %v281_v48 = vrot.slane %v1044_v16, 4  ;;  %p766_p2 = por %p765_p13, %p764_p6 }
  0x49   : > { %v283_v49 = vrot.slane %v1037_v14, 4  ;;  %v265_v50 = vsel %vm262_vm3, %v263_v42, %v264_v43  ;;  %v1103_v51 = vsel %vm262_vm3, %v264_v43, %v266_v44  ;;  %v1106_v52 = vsel %vm262_vm3, %v266_v44, %v268_v45 }
  0x4a   : > { %v258_v39 = vadd.f32 %v247_v35, %v240_v31  ;;  %v259_v40 = vadd.f32 %v1081_v36, %v241_v32  ;;  %v285_v53 = vrot.slane %v1040_v15, 4  ;;  %v278_v56 = vadd.f32 %v1106_v52, %v260_v41  ;;  %p767_p5 = pnand %p766_p2, %p760_p0 }
  0x4b   : > { %v282_v57 = vsel %vm209_vm0, %v280_v47, %v281_v48  ;;  %v1113_v58 = vsel %vm209_vm0, %v281_v48, %v283_v49  ;;  %v298_v60 = vrot.slane %v1027_v8, 5  ;;  %v299_v61 = vrot.slane %v1044_v16, 5 }
  0x4c   : > { %v276_v54 = vadd.f32 %v265_v50, %v258_v39  ;;  %v277_v55 = vadd.f32 %v1103_v51, %v259_v40  ;;  %v1116_v59 = vsel %vm209_vm0, %v283_v49, %v285_v53  ;;  %v301_v1 = vrot.slane %v1037_v14, 5 }
  0x4d   : > { %v295_v0 = vadd.f32 %v1116_v59, %v278_v56  ;;  %v300_v2 = vsel %vm297_vm4, %v298_v60, %v299_v61  ;;  %v303_v3 = vrot.slane %v1040_v15, 5  ;;  %v316_v9 = vrot.slane %v1027_v8, 6 }
  0x4e   : > { %v293_v62 = vadd.f32 %v282_v57, %v276_v54  ;;  %v294_v63 = vadd.f32 %v1113_v58, %v277_v55  ;;  %v317_v10 = vrot.slane %v1044_v16, 6  ;;  %v302_v11 = vsel %vm297_vm4, %v299_v61, %v301_v1 }
  0x4f   : > { %v319_v19 = vrot.slane %v1037_v14, 6  ;;  %v321_v20 = vrot.slane %v1040_v15, 6  ;;  %v1131_v21 = vsel %vm297_vm4, %v301_v1, %v303_v3  ;;  %v334_v25 = vrot.slane %v1027_v8, 7 }
  0x50   : > { %v311_v17 = vadd.f32 %v300_v2, %v293_v62  ;;  %v312_v23 = vadd.f32 %v302_v11, %v294_v63  ;;  %v318_v24 = vsel %vm315_vm5, %v316_v9, %v317_v10  ;;  %v313_v26 = vadd.f32 %v1131_v21, %v295_v0 }
  0x51   : > { %v320_v29 = vsel %vm315_vm5, %v317_v10, %v319_v19  ;;  %v1138_v31 = vsel %vm315_vm5, %v319_v19, %v321_v20  ;;  %v335_v35 = vrot.slane %v1044_v16, 7  ;;  %v337_v39 = vrot.slane %v1037_v14, 7 }
  0x52   : > { %v329_v32 = vadd.f32 %v318_v24, %v311_v17  ;;  %v330_v33 = vadd.f32 %v320_v29, %v312_v23  ;;  %v339_v40 = vrot.slane %v1040_v15, 7  ;;  %v331_v41 = vadd.f32 %v1138_v31, %v313_v26 }
  0x53   : > { %v1148_v8 = vsel %vm209_vm0, %v215_v13, %v1033_v12  ;;  %v261_v42 = vadd.f32 %v1096_v46, %v243_v34  ;;  %v270_v43 = vrot.slane %v1050_v18, 3  ;;  %v336_v44 = vsel %vm333_vm6, %v334_v25, %v335_v35 }
  0x54   : > { %v338_v47 = vsel %vm333_vm6, %v335_v35, %v337_v39  ;;  %v1155_v48 = vsel %vm333_vm6, %v337_v39, %v339_v40  ;;  %v287_v49 = vrot.slane %v1050_v18, 4  ;;  %v347_v50 = vadd.f32 %v336_v44, %v329_v32 }
  0x55   : > { %v348_v54 = vadd.f32 %v338_v47, %v330_v33  ;;  %v349_v55 = vadd.f32 %v1155_v48, %v331_v41  ;;  %v1160_v13 = vsel %vm262_vm3, %v268_v45, %v270_v43  ;;  %v305_v57 = vrot.slane %v1050_v18, 5 }
  0x56   : > { %v279_v34 = vadd.f32 %v1160_v13, %v261_v42  ;;  %v1164_v56 = vsel %vm209_vm0, %v285_v53, %v287_v49  ;;  %v323_v60 = vrot.slane %v1050_v18, 6  ;;  %v351_v61 = vadd.f32 %v347_v50, %v1044_v16 }
  0x57   : > { %v352_v62 = vadd.f32 %v348_v54, %v1037_v14  ;;  %v353_v63 = vadd.f32 %v349_v55, %v1040_v15  ;;  %v341_v0 = vrot.slane %v1050_v18, 7  ;;  %v1174_v1 = vsel %vm297_vm4, %v303_v3, %v305_v57 }
  0x58   : > { %v296_v45 = vadd.f32 %v1164_v56, %v279_v34  ;;  %v359_v53 = vadd.f32 %v351_v61, %v1061_v27  ;;  %v1180_v10 = vsel %vm315_vm5, %v321_v20, %v323_v60  ;;  %v356_v17 = vrot.slane %v1148_v8, 1 }
  0x59   : > { %v360_v2 = vadd.f32 %v352_v62, %v1064_v28  ;;  %v361_v9 = vadd.f32 %v353_v63, %v1070_v30  ;;  %v1188_v24 = vsel %vm333_vm6, %v339_v40, %v341_v0  ;;  %v363_v26 = vrot.slane %v1148_v8, 2 }
  0x5a   : > { %v314_v16 = vadd.f32 %v1174_v1, %v296_v45  ;;  %v366_v19 = vadd.f32 %v359_v53, %v1081_v36  ;;  %v357_v36 = vsel %vm226_vm1, %v234_v22, %v356_v17  ;;  %v377_v42 = vrot.slane %v1148_v8, 4 }
  0x5b   : > { %v367_v23 = vadd.f32 %v360_v2, %v1084_v37  ;;  %v368_v3 = vadd.f32 %v361_v9, %v1096_v46  ;;  %v364_v54 = vsel %vm244_vm2, %v252_v38, %v363_v26  ;;  %v384_v55 = vrot.slane %v1148_v8, 5 }
  0x5c   : > { %v332_v27 = vadd.f32 %v1180_v10, %v314_v16  ;;  %v373_v25 = vadd.f32 %v366_v19, %v1103_v51  ;;  %v370_v51 = vrot.slane %v1148_v8, 3  ;;  %v391_v9 = vrot.slane %v1148_v8, 6 }
  0x5d   : > { %v374_v20 = vadd.f32 %v367_v23, %v1106_v52  ;;  %v375_v32 = vadd.f32 %v368_v3, %v1160_v13  ;;  %v385_v19 = vsel %vm297_vm4, %v305_v57, %v384_v55 }
  0x5e   : > { %v350_v33 = vadd.f32 %v1188_v24, %v332_v27  ;;  %v380_v35 = vadd.f32 %v373_v25, %v1113_v58  ;;  %v371_v63 = vsel %vm262_vm3, %v270_v43, %v370_v51  ;;  %v398_v43 = vrot.slane %v1148_v8, 7 }
  0x5f   : > { %v381_v39 = vadd.f32 %v374_v20, %v1116_v59  ;;  %v382_v40 = vadd.f32 %v375_v32, %v1164_v56  ;;  %v392_v20 = vsel %vm315_vm5, %v323_v60, %v391_v9 }
  0x60   : > { %v354_v41 = vadd.f32 %v350_v33, %v1050_v18  ;;  %v387_v44 = vadd.f32 %v380_v35, %v302_v11  ;;  %v378_v11 = vsel %vm209_vm0, %v287_v49, %v377_v42  ;;  %v409_v33 = vrot.slane %v1033_v12, 1 }
  0x61   : > { %v388_v50 = vadd.f32 %v381_v39, %v1131_v21  ;;  %v389_v22 = vadd.f32 %v382_v40, %v1174_v1  ;;  %v399_v35 = vsel %vm333_vm6, %v341_v0, %v398_v43 }
  0x62   : > { %v362_v58 = vadd.f32 %v357_v36, %v354_v41  ;;  %v394_v34 = vadd.f32 %v387_v44, %v320_v29  ;;  %v410_v60 = vsel %vm226_vm1, %v356_v17, %v409_v33  ;;  %v437_v17 = vrot.slane %v1033_v12, 5 }
  0x63   : > { %v395_v61 = vadd.f32 %v388_v50, %v1138_v31  ;;  %v396_v62 = vadd.f32 %v389_v22, %v1180_v10 }
  0x64   : > { %v369_v45 = vadd.f32 %v364_v54, %v362_v58  ;;  %v401_v53 = vadd.f32 %v394_v34, %v338_v47 }
  0x65   : > { %v402_v2 = vadd.f32 %v395_v61, %v1155_v48  ;;  %v403_v38 = vadd.f32 %v396_v62, %v1188_v24 }
  0x66   : > { %v376_v16 = vadd.f32 %v371_v63, %v369_v45  ;;  %v405_v29 = vadd.f32 %v401_v53, %v1037_v14  ;;  %v444_v53 = vrot.slane %v1033_v12, 6 }
  0x67   : > { %v406_v23 = vadd.f32 %v402_v2, %v1040_v15  ;;  %v407_v3 = vadd.f32 %v403_v38, %v1050_v18  ;;  %v438_v38 = vsel %vm297_vm4, %v384_v55, %v437_v17 }
  0x68   : > { %v383_v27 = vadd.f32 %v378_v11, %v376_v16  ;;  %v412_v47 = vadd.f32 %v405_v29, %v1064_v28  ;;  %v451_v16 = vrot.slane %v1033_v12, 7 }
  0x69   : > { %v413_v49 = vadd.f32 %v406_v23, %v1070_v30  ;;  %v414_v25 = vadd.f32 %v407_v3, %v357_v36  ;;  %v416_v30 = vrot.slane %v1033_v12, 2 }
  0x6a   : > { %v390_v32 = vadd.f32 %v385_v19, %v383_v27  ;;  %v419_v57 = vadd.f32 %v412_v47, %v1084_v37 }
  0x6b   : > { %v420_v14 = vadd.f32 %v413_v49, %v1096_v46  ;;  %v421_v39 = vadd.f32 %v414_v25, %v364_v54  ;;  %v423_v46 = vrot.slane %v1033_v12, 3  ;;  %v430_v54 = vrot.slane %v1033_v12, 4 }
  0x6c   : > { %v397_v40 = vadd.f32 %v392_v20, %v390_v32  ;;  %v426_v41 = vadd.f32 %v419_v57, %v1106_v52  ;;  %v417_v58 = vsel %vm244_vm2, %v363_v26, %v416_v30 }
  0x6d   : > { %v427_v28 = vadd.f32 %v420_v14, %v1160_v13  ;;  %v428_v36 = vadd.f32 %v421_v39, %v371_v63  ;;  %v424_v63 = vsel %vm262_vm3, %v370_v51, %v423_v46 }
  0x6e   : > { %v404_v44 = vadd.f32 %v399_v35, %v397_v40  ;;  %v433_v50 = vadd.f32 %v426_v41, %v1116_v59 }
  0x6f   : > { %v434_v37 = vadd.f32 %v427_v28, %v1164_v56  ;;  %v435_v22 = vadd.f32 %v428_v36, %v378_v11  ;;  %v431_v11 = vsel %vm209_vm0, %v377_v42, %v430_v54 }
  0x70   : > { %v408_v0 = vadd.f32 %v404_v44, %v1148_v8  ;;  %v440_v52 = vadd.f32 %v433_v50, %v1131_v21 }
  0x71   : > { %v441_v13 = vadd.f32 %v434_v37, %v1174_v1  ;;  %v442_v34 = vadd.f32 %v435_v22, %v385_v19 }
  0x72   : > { %v415_v61 = vadd.f32 %v410_v60, %v408_v0  ;;  %v447_v59 = vadd.f32 %v440_v52, %v1138_v31 }
  0x73   : > { %v448_v56 = vadd.f32 %v441_v13, %v1180_v10  ;;  %v449_v62 = vadd.f32 %v442_v34, %v392_v20 }
  0x74   : > { %v422_v45 = vadd.f32 %v417_v58, %v415_v61  ;;  %v454_v21 = vadd.f32 %v447_v59, %v1155_v48 }
  0x75   : > { %v455_v1 = vadd.f32 %v448_v56, %v1188_v24  ;;  %v456_v26 = vadd.f32 %v449_v62, %v399_v35  ;;  %v445_v24 = vsel %vm315_vm5, %v391_v9, %v444_v53 }
  0x76   : > { %v429_v2 = vadd.f32 %v424_v63, %v422_v45  ;;  %v458_v31 = vadd.f32 %v454_v21, %v1040_v15  ;;  %v452_v15 = vsel %vm333_vm6, %v398_v43, %v451_v16 }
  0x77   : > { %v459_v10 = vadd.f32 %v455_v1, %v1050_v18  ;;  %v460_v51 = vadd.f32 %v456_v26, %v1148_v8 }
  0x78   : > { %v436_v42 = vadd.f32 %v431_v11, %v429_v2  ;;  %v462_v48 = vmul.f32 0.04, %v458_v31 }
  0x79   : > { %v463_v19 = vmul.f32 0.04, %v459_v10  ;;  %v464_v29 = vmul.f32 0.04, %v460_v51 }
  0x7a   : > { %v443_v23 = vadd.f32 %v438_v38, %v436_v42  ;;  %466 = vst [vmem:[%s191_s21] sm:$0xff] %v462_v48  ;;  %v470_v18 = vsub.f32 %v1018_v4, %v462_v48 }
  0x7b   : > { %467 = vst [vmem:[%s191_s21 + $0x8] sm:$0xff] %v463_v19  ;;  %468 = vst [vmem:[%s191_s21 + $0x10] sm:$0xff] %v464_v29  ;;  %v471_v8 = vsub.f32 %v1020_v5, %v463_v19  ;;  %v472_v55 = vsub.f32 %v1022_v6, %v464_v29 }
  0x7c   : > { %v450_v3 = vadd.f32 %v445_v24, %v443_v23  ;;  %474 = vst [vmem:[%s1262_s4] sm:$0xff] %v470_v18 }
  0x7d   : > { %475 = vst [vmem:[%s1262_s4 + $0x8] sm:$0xff] %v471_v8  ;;  %476 = vst [vmem:[%s1262_s4 + $0x10] sm:$0xff] %v472_v55 }
  0x7e   : > { %v457_v9 = vadd.f32 %v452_v15, %v450_v3 }
  0x80   : > { %v461_v4 = vadd.f32 %v457_v9, %v1033_v12 }
  0x82   : > { %v465_v5 = vmul.f32 0.04, %v461_v4 }
  0x84   : > { %469 = vst [vmem:[%s191_s21 + $0x18] sm:$0xff] %v465_v5  ;;  %v473_v6 = vsub.f32 %v1024_v7, %v465_v5 }
  0x85   : > { %770 = shalt.err (!%p767_p5)
}
  0x86   : > { %s771_s8 = scalar_lea.hbm %s1275_s19, 512  ;;  %s775_s5 = scalar_lea.hbm %s1365_s2, 1024 }
  0x87   : > { %p772_p4 = scmp.ne.s32.totalorder %s1275_s19, %s771_s8  ;;  %p776_p12 = scmp.lt.u32.totalorder %s1275_s19, %s1365_s2 }
  0x88   : > { %p777_p1 = scmp.lt.u32.totalorder %s775_s5, %s771_s8  ;;  %p779_p8 = scmp.lt.u32.totalorder %s771_s8, %s1275_s19 }
  0x89   : > { %p773_p7 = pnand %p772_p4, %p1373_p9 }
  0x8a   : > { %p778_p3 = por %p777_p1, %p776_p12 }
  0x8b   : > { %p774_p10 = pneg %p773_p7 }
  0x8c   : > { %p780_p11 = por %p779_p8, %p778_p3 }
  0x8e   : > { %p781_p0 = pnand %p780_p11, %p774_p10 }
  0x90   : > { %784 = shalt.err (!%p781_p0)
}
  0x91   : > { %s877_s12 = smov 128   ;;  %s878_s20 = smov 8   ;;  %477 = vst [vmem:[%s1262_s4 + $0x18] sm:$0xff] %v473_v6 }
  0x92   : > { %659 = dma.vmem_to_hbm [thread:$0]  (%p1373_p9), %s1268_s30, 512, %s1275_s19, %s484_s26, %s877_s12, %s877_s12, %s878_s20  }
  0x93   : > { %s479_s27 = scalar_lea.sflag [#allocation4], %s1007_s3  ;;  %s785_s28 = scalar_lea.vmem %s1277_s6, 512 }
  0x94   : > { %p786_p6 = scmp.ne.s32.totalorder %s1277_s6, %s785_s28  ;;  %s879_s29 = smov [#allocation5]  }
  0x95   : > { %s789_s7 = sshll.u32 %s879_s29, 4  ;;  %s790_s7 = int_to_ptr.vmem [resolvable:$false] %s789_s7 }
  0x96   : > { %p787_p13 = pnand %p786_p6, %p1373_p9  ;;  %s791_s8 = scalar_lea.vmem %s790_s7, 1024 }
  0x97   : > { %p792_p5 = scmp.lt.s32.totalorder %s1277_s6, %s790_s7  ;;  %p793_p4 = scmp.lt.s32.totalorder %s791_s8, %s785_s28 }
  0x98   : > { %p788_p2 = pneg %p787_p13 }
  0x99   : > { %p794_p7 = por %p793_p4, %p792_p5 }
  0x9b   : > { %p795_p10 = pnand %p794_p7, %p788_p2 }
  0x9d   : > { %798 = shalt.err (!%p795_p10)
}
  0x9e   : > { %s799_s30 = scalar_lea.hbm %s1283_s25, 512  ;;  %s803_s26 = scalar_lea.hbm %s1364_s1, 1024 }
  0x9f   : > { %p800_p12 = scmp.ne.s32.totalorder %s1283_s25, %s799_s30  ;;  %p804_p8 = scmp.lt.u32.totalorder %s1283_s25, %s1364_s1 }
  0xa0   : > { %p805_p11 = scmp.lt.u32.totalorder %s803_s26, %s799_s30  ;;  %p807_p6 = scmp.lt.u32.totalorder %s799_s30, %s1283_s25 }
  0xa1   : > { %p801_p1 = pnand %p800_p12, %p1373_p9 }
  0xa2   : > { %p806_p0 = por %p805_p11, %p804_p8 }
  0xa3   : > { %p802_p3 = pneg %p801_p1 }
  0xa4   : > { %p808_p13 = por %p807_p6, %p806_p0 }
  0xa6   : > { %p809_p2 = pnand %p808_p13, %p802_p3 }
  0xa8   : > { %812 = shalt.err (!%p809_p2)
}
  0xa9   : > { %658 = dma.vmem_to_hbm [thread:$0]  (%p1373_p9), %s1277_s6, 512, %s1283_s25, %s479_s27, %s877_s12, %s877_s12, %s878_s20  }
  0xaa PF: > { %s530_s5 = sand.u32 1, %s851_s9   ;;  %p1374_p5 = scmp.ne.s32.totalorder %s1370_s24, 0 }
  0xab   : > { %p1375_p4 = scmp.ge.s32.totalorder %s871_s14, 2  ;;  %s531_s16 = scalar_lea.sflag [#allocation4], %s530_s5 }
  0xad   : > { %p667_p7 = pnand %p1375_p4, %p1374_p5 }
  0xaf   : > { %842 = dma.done.wait (!%p667_p7), %s531_s16, 512  }
  0xb0   : > { %844 = vsyncadd (!%p667_p7), %s531_s16, 4294966784  ;;  %s540_s22 = scalar_lea.sflag [#allocation7], %s530_s5 }
  0xb1   : > { %846 = dma.done.wait (!%p667_p7), %s540_s22, 512  }
  0xb2   : > { %848 = vsyncadd (!%p667_p7), %s540_s22, 4294966784  ;;  %s22_s14 = sadd.s32 1, %s871_s14   ;;  %s1376_s9 = smov %s855_s10 }
  0xb3   : > { %p19_p10 = scmp.ge.s32.totalorder %s22_s14, 4   ;;  %s1377_s10 = smov %s859_s11 }
  0xb4   : > { %s1378_s11 = smov %s951_s23  ;;  %s1379_s12 = smov %s867_s13 }
  0xb5   : > { %s1380_s13 = smov %s1382_s17  ;;  %21 = sbr.rel (!%p19_p10) target bundleno = 8 (0x8), region = 86 }
  0xbc   :  { %545 = vsyncpa [#allocation3], 1 }
  0xbd   :  { %547 = vsyncpa [#allocation3 + $0x1], 1 }
  0xbe   :  { %548 = vsyncpa [#allocation4], 1 }
  0xbf   :  { %550 = vsyncpa [#allocation4 + $0x1], 1 }
  0xc0   :  { %551 = vsyncpa [#allocation7], 1 }
  0xc1   :  { %553 = vsyncpa [#allocation7 + $0x1], 1 }

</bundles_post_ra>
